<compile_context>
chip_gen: v6e
topology: v6e:2x2x1
jax: 0.10.0
libtpu: 0.0.40
codegen_flags: <defaults>
</compile_context>

<pallas_src>
import functools

import jax
import jax.numpy as jnp
from jax.experimental import pallas as pl
from jax.experimental.pallas import tpu as pltpu


# ---------------------------------------------------------------------------
# Small helpers
# ---------------------------------------------------------------------------
def _round_up(x, m):
    return -(-x // m) * m


def _budgets(vmem_limit_bytes=None):
    """Device-aware scoped-VMEM limit and per-block budgets."""
    if vmem_limit_bytes is None:
        try:
            cap = int(getattr(pltpu.get_tpu_info(), "vmem_capacity_bytes", 0))
        except Exception:
            cap = 0
        if cap <= 0:
            cap = 64 * 1024 * 1024          # conservative fallback (v7x per-core)
        vmem_limit_bytes = min(cap * 3 // 4, 100 * 1024 * 1024)
    # fused: ~2x(in) + 2x(out) + temps  ->  keep one slab under limit/8
    fused_budget = vmem_limit_bytes // 8
    tiled_budget = max(vmem_limit_bytes // 12, 2 * 1024 * 1024)
    return vmem_limit_bytes, fused_budget, tiled_budget


def _plan_tiles(hw, rows_bytes, budget):
    """Pick (hw_pad, hw_tile): hw_tile multiple of 128, divides hw_pad,
    rows_bytes * hw_tile <= budget (>=128 lanes minimum)."""
    max_lanes = max(128, (budget // max(rows_bytes, 1)) // 128 * 128)
    if hw % 128 == 0:
        t = min(hw, max_lanes)
        while hw % t != 0:
            t -= 128
        return hw, t
    t = min(max_lanes, _round_up(hw, 128))
    return _round_up(hw, t), t


def _weight_specs(rows, hidden):
    zero = lambda *a: (0, 0)                     # works for 1- or 3-axis grids
    return [pl.BlockSpec((rows, hidden), zero),  # w1^T (block-diag, f32)
            pl.BlockSpec((1, hidden), zero),     # b1
            pl.BlockSpec((rows, hidden), zero),  # w2   (block-diag, f32)
            pl.BlockSpec((rows, 1), zero)]       # b2


# ---------------------------------------------------------------------------
# Excitation MLP (tiny): pure VPU multiply + XLU reduce, no MXU.
# With block-diagonal weights this computes the per-batch-element MLP for all
# packed batch elements at once.
# ---------------------------------------------------------------------------
def _excite(avg_c1, w1t, b1_row, w2, b2_col):
    # avg_c1: (R, 1) f32 per-(batch,channel) means,    R = nb*C
    # w1t   : (R, Hb) block-diag of w1^T,              Hb = nb*Cr
    # b1_row: (1, Hb)
    # w2    : (R, Hb) block-diag of w2 (out, in)
    # b2_col: (R, 1)
    h = jnp.sum(w1t * avg_c1, axis=0, keepdims=True) + b1_row      # (1, Hb)
    h = jnp.maximum(h, 0.0)
    z = jnp.sum(w2 * h, axis=1, keepdims=True) + b2_col            # (R, 1)
    return jax.nn.sigmoid(z)                                       # (R, 1)


# ---------------------------------------------------------------------------
# Path A: fused single pass — one full (R, HW) slab per grid step.
# HBM traffic: 1 read + 1 write.
# ---------------------------------------------------------------------------
def _cse_kernel_fused(x_ref, w1t_ref, b1_ref, w2_ref, b2_ref, o_ref, *, inv_hw):
    x = x_ref[0]                                                   # (R, HW) native dtype
    # f32 only inside the reduce -> no second full-precision slab copy.
    avg = jnp.sum(x.astype(jnp.float32), axis=1, keepdims=True) * inv_hw
    s = _excite(avg, w1t_ref[...], b1_ref[...], w2_ref[...], b2_ref[...])
    o_ref[0] = x * s.astype(o_ref.dtype)                           # native-dtype multiply


# ---------------------------------------------------------------------------
# Path B: tiled two-pass — grid = (G, 2, T).
#   pass 0: accumulate per-channel sums of each (R, hw_tile) tile into scratch
#   pass 1: at t == 0 compute the sigmoid gate once; every t applies it.
# HBM traffic: 2 reads + 1 write; VMEM footprint bounded by the tile size.
# ---------------------------------------------------------------------------
def _cse_kernel_tiled(x_ref, w1t_ref, b1_ref, w2_ref, b2_ref, o_ref,
                      sum_ref, scale_ref, *, inv_hw):
    p = pl.program_id(1)   # 0 = squeeze (accumulate), 1 = excite + gate
    t = pl.program_id(2)   # HW tile index

    @pl.when(jnp.logical_and(p == 0, t == 0))
    def _():
        sum_ref[...] = jnp.zeros_like(sum_ref)

    @pl.when(p == 0)
    def _():
        sum_ref[...] += jnp.sum(x_ref[0].astype(jnp.float32), axis=1, keepdims=True)

    @pl.when(jnp.logical_and(p == 1, t == 0))
    def _():
        scale_ref[...] = _excite(sum_ref[...] * inv_hw, w1t_ref[...], b1_ref[...],
                                 w2_ref[...], b2_ref[...])

    @pl.when(p == 1)
    def _():
        o_ref[0] = x_ref[0] * scale_ref[...].astype(o_ref.dtype)


# ---------------------------------------------------------------------------
# Wrapper
# ---------------------------------------------------------------------------
def cse_block(x_nchw, w1, b1, w2, b2, *, hw_tile=None, nb=None,
              vmem_limit_bytes=None, inplace=False):
    """Channel squeeze-and-excitation.

    x_nchw: (N, C, H, W), any float dtype (kept native for I/O).
    w1: (Cr, C)  b1: (Cr,)   -- first  1x1 conv (PyTorch layout, squeezed)
    w2: (C, Cr)  b2: (C,)    -- second 1x1 conv
    hw_tile / nb: override knobs (mainly for tests); auto-chosen when None.
    Returns (N, C, H, W) in x's dtype."""
    N, C, H, W = x_nchw.shape
    Cr = int(w1.shape[0])
    HW = H * W
    dtype = x_nchw.dtype
    itemsize = jnp.dtype(dtype).itemsize
    sub_mult = max(8, 32 // itemsize)          # 8 f32 / 16 bf16 / 32 int8

    vmem_limit, fused_budget, tiled_budget = _budgets(vmem_limit_bytes)

    def rounded_block_bytes(rows, lanes):      # honest VMEM accounting
        return _round_up(rows, sub_mult) * _round_up(lanes, 128) * itemsize

    # ---- choose batch packing factor nb ------------------------------------
    if nb is None:
        if rounded_block_bytes(C, HW) <= fused_budget:
            # Pack as many batch elements as fit the fused budget (fills
            # sublanes when C < 8 and amortizes per-step overhead).
            nb_cap = max(1, min(64, 512 // max(C, 1)))
            nb = 1
            for d in range(1, min(N, nb_cap) + 1):
                if N % d == 0 and rounded_block_bytes(d * C, HW) <= fused_budget:
                    nb = d
        else:
            # Tiled path: pack only enough to fill sublanes when C is narrow.
            nb = 1
            if C < sub_mult:
                want = -(-sub_mult // C)
                for d in range(min(want, N), 0, -1):
                    if N % d == 0:
                        nb = d
                        break
    assert N % nb == 0, "nb must divide the batch size"
    G = N // nb
    R = nb * C

    # Free view: contiguous merge of (nb, C) into the sublane axis, H*W on lanes.
    x = x_nchw.reshape(G, R, HW)

    # ---- tiny excitation weights; block-diagonal copies for packed batches --
    w1t = jnp.asarray(w1, jnp.float32).T                 # (C, Cr)
    w2m = jnp.asarray(w2, jnp.float32)                   # (C, Cr)
    b1f = jnp.asarray(b1, jnp.float32)
    b2f = jnp.asarray(b2, jnp.float32)
    if nb > 1:
        eye = jnp.eye(nb, dtype=jnp.float32)
        w1t_bd = jnp.kron(eye, w1t)                      # (R, nb*Cr) block-diag
        w2_bd = jnp.kron(eye, w2m)                       # (R, nb*Cr) block-diag
        b1_bd = jnp.tile(b1f, nb).reshape(1, nb * Cr)
        b2_bd = jnp.tile(b2f, nb).reshape(R, 1)
    else:
        w1t_bd, w2_bd = w1t, w2m
        b1_bd = b1f.reshape(1, Cr)
        b2_bd = b2f.reshape(C, 1)
    Hb = w1t_bd.shape[1]                                 # nb * Cr

    alias_kwargs = {"input_output_aliases": {0: 0}} if inplace else {}
    use_fused = hw_tile is None and rounded_block_bytes(R, HW) <= fused_budget

    if use_fused:
        # ---- fused single pass: whole (R, HW) slab per grid step -----------
        out = pl.pallas_call(
            functools.partial(_cse_kernel_fused, inv_hw=1.0 / HW),
            out_shape=jax.ShapeDtypeStruct((G, R, HW), dtype),
            grid=(G,),
            in_specs=[pl.BlockSpec((1, R, HW), lambda g: (g, 0, 0))]
                     + _weight_specs(R, Hb),
            out_specs=pl.BlockSpec((1, R, HW), lambda g: (g, 0, 0)),
            compiler_params=pltpu.CompilerParams(
                dimension_semantics=("parallel",),
                vmem_limit_bytes=vmem_limit),
            **alias_kwargs,
        )(x, w1t_bd, b1_bd, w2_bd, b2_bd)
        return out.reshape(N, C, H, W)

    # ---- tiled two-pass ------------------------------------------------------
    if hw_tile is None:
        rows_bytes = _round_up(R, sub_mult) * itemsize
        hw_pad, hw_tile = _plan_tiles(HW, rows_bytes, tiled_budget)
    else:
        assert hw_tile % 128 == 0 or hw_tile == HW, "hw_tile must be a multiple of 128"
        assert HW % hw_tile == 0, "hw_tile must divide H*W"
        hw_pad = HW
    if hw_pad != HW:
        # Zero pad to the tile size; 1/HW below uses the true HW so the mean is
        # exact and padded columns produce zeros that are sliced off at the end.
        x = jnp.pad(x, ((0, 0), (0, 0), (0, hw_pad - HW)))
    T = hw_pad // hw_tile

    out = pl.pallas_call(
        functools.partial(_cse_kernel_tiled, inv_hw=1.0 / HW),
        out_shape=jax.ShapeDtypeStruct((G, R, hw_pad), dtype),
        grid=(G, 2, T),
        in_specs=[pl.BlockSpec((1, R, hw_tile), lambda g, p, t: (g, 0, t))]
                 + _weight_specs(R, Hb),
        # During pass 0 every step maps the output to block (g, 0, 0); the block
        # index never changes so Pallas never flushes the (unwritten) buffer.
        # Pass 1 writes each tile exactly once before the index moves on.  This
        # relies on documented accumulator-pattern behaviour (output blocks are
        # written back only on block-index change and never prefetched).
        out_specs=pl.BlockSpec((1, R, hw_tile), lambda g, p, t: (g, 0, t * p)),
        scratch_shapes=[pltpu.VMEM((R, 1), jnp.float32),   # per-channel sums
                        pltpu.VMEM((R, 1), jnp.float32)],  # sigmoid gate
        compiler_params=pltpu.CompilerParams(
            dimension_semantics=("parallel", "arbitrary", "arbitrary"),
            vmem_limit_bytes=vmem_limit),
        **alias_kwargs,
    )(x, w1t_bd, b1_bd, w2_bd, b2_bd)

    if hw_pad != HW:
        out = out[:, :, :HW]
    return out.reshape(N, C, H, W)


# ---------------------------------------------------------------------------
# Pure-JAX reference of the PyTorch forward.
# ---------------------------------------------------------------------------
def _reference(x_nchw, w1, b1, w2, b2):
    avg = jnp.mean(x_nchw.astype(jnp.float32), axis=(2, 3))    # (N, C)
    h = jnp.maximum(avg @ w1.T + b1, 0.0)                      # (N, Cr)
    s = jax.nn.sigmoid(h @ w2.T + b2)                          # (N, C)
    return (x_nchw * s[:, :, None, None]).astype(x_nchw.dtype)


if __name__ == "__main__":
    # Shapes consistent with CSE_Block(in_channel=4, r=2, w=16, h=16)
    N, C, H, W = 2, 4, 16, 16
    r = 2
    Cr = C // r

    key = jax.random.PRNGKey(0)
    kx, k1, k2, k3, k4 = jax.random.split(key, 5)

    x = jax.random.normal(kx, (N, C, H, W), dtype=jnp.float32)
    w1 = 0.2 * jax.random.normal(k1, (Cr, C), dtype=jnp.float32)
    b1 = 0.1 * jax.random.normal(k2, (Cr,), dtype=jnp.float32)
    w2 = 0.2 * jax.random.normal(k3, (C, Cr), dtype=jnp.float32)
    b2 = 0.1 * jax.random.normal(k4, (C,), dtype=jnp.float32)

    ref = jax.block_until_ready(_reference(x, w1, b1, w2, b2))

    # Path A: fused single-pass with auto batch packing (nb=2 -> 8 sublanes).
    out_fused = jax.block_until_ready(cse_block(x, w1, b1, w2, b2))
    assert out_fused.shape == (N, C, H, W)
    assert jnp.allclose(out_fused, ref, atol=1e-5, rtol=1e-5), "fused mismatch"

    # Path A without packing (per-image slab, same as the original layout).
    out_nb1 = jax.block_until_ready(cse_block(x, w1, b1, w2, b2, nb=1))
    assert jnp.allclose(out_nb1, ref, atol=1e-5, rtol=1e-5), "fused nb=1 mismatch"

    # Path B: tiled two-pass (forced hw_tile=128 -> 2 HW tiles) exercising the
    # large-shape / small-VMEM code path.
    out_tiled = jax.block_until_ready(cse_block(x, w1, b1, w2, b2, hw_tile=128))
    assert jnp.allclose(out_tiled, ref, atol=1e-5, rtol=1e-5), "tiled mismatch"

    # bf16 I/O exercises the native-dtype gate multiply.
    xb = x.astype(jnp.bfloat16)
    refb = jax.block_until_ready(_reference(xb, w1, b1, w2, b2))
    outb = jax.block_until_ready(cse_block(xb, w1, b1, w2, b2))
    assert jnp.allclose(outb.astype(jnp.float32), refb.astype(jnp.float32),
                        atol=5e-2, rtol=5e-2), "bf16 mismatch"

    print("KERNEL_OK")
</pallas_src>

<mosaic_0001>
module attributes {stable_mosaic.version = 11 : i64} {
  func.func @_cse_kernel_fused(%arg0: i32, %arg1: memref<1x8x256xf32, #tpu.memory_space<vmem>>, %arg2: memref<8x4xf32, #tpu.memory_space<vmem>>, %arg3: memref<1x4xf32, #tpu.memory_space<vmem>>, %arg4: memref<8x4xf32, #tpu.memory_space<vmem>>, %arg5: memref<8x1xf32, #tpu.memory_space<vmem>>, %arg6: memref<1x8x256xf32, #tpu.memory_space<vmem>>) attributes {dimension_semantics = [#tpu.dimension_semantics<parallel>], iteration_bounds = array<i64: 1>, scalar_prefetch = 0 : i64, scratch_operands = 0 : i64, tpu.core_type = #tpu.core_type<tc>, window_params = [{transform_indices = @transform_0, window_bounds = array<i64: 1, 8, 256>}, {pipeline_mode = #tpu.pipeline_mode<synchronous>, transform_indices = @transform_1, window_bounds = array<i64: 8, 4>}, {pipeline_mode = #tpu.pipeline_mode<synchronous>, transform_indices = @transform_2, window_bounds = array<i64: 1, 4>}, {pipeline_mode = #tpu.pipeline_mode<synchronous>, transform_indices = @transform_3, window_bounds = array<i64: 8, 4>}, {pipeline_mode = #tpu.pipeline_mode<synchronous>, transform_indices = @transform_4, window_bounds = array<i64: 8, 1>}, {transform_indices = @transform_5, window_bounds = array<i64: 1, 8, 256>}]} {
    %c0 = arith.constant 0 : index
    %c0_0 = arith.constant 0 : index
    %c0_1 = arith.constant 0 : index
    %0 = vector.load %arg1[%c0, %c0_0, %c0_1] : memref<1x8x256xf32, #tpu.memory_space<vmem>>, vector<1x8x256xf32>
    %1 = vector.shape_cast %0 : vector<1x8x256xf32> to vector<8x256xf32>
    %cst = arith.constant dense<0.000000e+00> : vector<8xf32>
    %2 = vector.multi_reduction <add>, %1, %cst [1] : vector<8x256xf32> to vector<8xf32>
    %3 = vector.shape_cast %2 : vector<8xf32> to vector<8x1xf32>
    %cst_2 = arith.constant 3.906250e-03 : f32
    %4 = vector.broadcast %cst_2 : f32 to vector<8x1xf32>
    %5 = arith.mulf %3, %4 : vector<8x1xf32>
    %c0_3 = arith.constant 0 : index
    %c0_4 = arith.constant 0 : index
    %6 = vector.load %arg2[%c0_3, %c0_4] : memref<8x4xf32, #tpu.memory_space<vmem>>, vector<8x4xf32>
    %c0_5 = arith.constant 0 : index
    %c0_6 = arith.constant 0 : index
    %7 = vector.load %arg3[%c0_5, %c0_6] : memref<1x4xf32, #tpu.memory_space<vmem>>, vector<1x4xf32>
    %c0_7 = arith.constant 0 : index
    %c0_8 = arith.constant 0 : index
    %8 = vector.load %arg4[%c0_7, %c0_8] : memref<8x4xf32, #tpu.memory_space<vmem>>, vector<8x4xf32>
    %c0_9 = arith.constant 0 : index
    %c0_10 = arith.constant 0 : index
    %9 = vector.load %arg5[%c0_9, %c0_10] : memref<8x1xf32, #tpu.memory_space<vmem>>, vector<8x1xf32>
    %10 = vector.broadcast %5 : vector<8x1xf32> to vector<8x4xf32>
    %11 = arith.mulf %6, %10 : vector<8x4xf32>
    %cst_11 = arith.constant dense<0.000000e+00> : vector<4xf32>
    %12 = vector.multi_reduction <add>, %11, %cst_11 [0] : vector<8x4xf32> to vector<4xf32>
    %13 = vector.shape_cast %12 : vector<4xf32> to vector<1x4xf32>
    %14 = arith.addf %13, %7 : vector<1x4xf32>
    %cst_12 = arith.constant 0.000000e+00 : f32
    %15 = vector.broadcast %cst_12 : f32 to vector<1x4xf32>
    %16 = arith.maximumf %14, %15 : vector<1x4xf32>
    %17 = vector.broadcast %16 : vector<1x4xf32> to vector<8x4xf32>
    %18 = arith.mulf %8, %17 : vector<8x4xf32>
    %cst_13 = arith.constant dense<0.000000e+00> : vector<8xf32>
    %19 = vector.multi_reduction <add>, %18, %cst_13 [1] : vector<8x4xf32> to vector<8xf32>
    %20 = vector.shape_cast %19 : vector<8xf32> to vector<8x1xf32>
    %21 = arith.addf %20, %9 : vector<8x1xf32>
    %22 = arith.negf %21 : vector<8x1xf32>
    %23 = math.exp %22 : vector<8x1xf32>
    %cst_14 = arith.constant 1.000000e+00 : f32
    %24 = vector.broadcast %cst_14 : f32 to vector<8x1xf32>
    %25 = arith.addf %24, %23 : vector<8x1xf32>
    %26 = arith.divf %24, %25 : vector<8x1xf32>
    %27 = vector.broadcast %26 : vector<8x1xf32> to vector<8x256xf32>
    %28 = arith.mulf %1, %27 : vector<8x256xf32>
    %c0_15 = arith.constant 0 : index
    %c0_16 = arith.constant 0 : index
    %c0_17 = arith.constant 0 : index
    %29 = vector.load %arg6[%c0_15, %c0_16, %c0_17] : memref<1x8x256xf32, #tpu.memory_space<vmem>>, vector<1x8x256xf32>
    %30 = vector.shape_cast %29 : vector<1x8x256xf32> to vector<8x256xf32>
    %31 = vector.shape_cast %28 : vector<8x256xf32> to vector<1x8x256xf32>
    tpu.vector_store %arg6[%c0_15, %c0_16, %c0_17], %31 {strides = array<i32>} : memref<1x8x256xf32, #tpu.memory_space<vmem>>, vector<1x8x256xf32>,
    return
  }
  func.func @transform_0(%arg0: i32) -> (i32, i32, i32) {
    %c0_i32 = arith.constant 0 : i32
    %c0_i32_0 = arith.constant 0 : i32
    %c0_i32_1 = arith.constant 0 : i32
    return %arg0, %c0_i32, %c0_i32_0 : i32, i32, i32
  }
  func.func @transform_1(%arg0: i32) -> (i32, i32) {
    %c0_i32 = arith.constant 0 : i32
    %c0_i32_0 = arith.constant 0 : i32
    %c0_i32_1 = arith.constant 0 : i32
    return %c0_i32, %c0_i32_0 : i32, i32
  }
  func.func @transform_2(%arg0: i32) -> (i32, i32) {
    %c0_i32 = arith.constant 0 : i32
    %c0_i32_0 = arith.constant 0 : i32
    %c0_i32_1 = arith.constant 0 : i32
    return %c0_i32, %c0_i32_0 : i32, i32
  }
  func.func @transform_3(%arg0: i32) -> (i32, i32) {
    %c0_i32 = arith.constant 0 : i32
    %c0_i32_0 = arith.constant 0 : i32
    %c0_i32_1 = arith.constant 0 : i32
    return %c0_i32, %c0_i32_0 : i32, i32
  }
  func.func @transform_4(%arg0: i32) -> (i32, i32) {
    %c0_i32 = arith.constant 0 : i32
    %c0_i32_0 = arith.constant 0 : i32
    %c0_i32_1 = arith.constant 0 : i32
    return %c0_i32, %c0_i32_0 : i32, i32
  }
  func.func @transform_5(%arg0: i32) -> (i32, i32, i32) {
    %c0_i32 = arith.constant 0 : i32
    %c0_i32_0 = arith.constant 0 : i32
    %c0_i32_1 = arith.constant 0 : i32
    return %arg0, %c0_i32, %c0_i32_0 : i32, i32, i32
  }
}

</mosaic_0001>

<bundles_post_ra>
// kernel: tpu_custom_call.1
= control target key start
LH: loop header
LB: loop body
LE: loop exit
PB: predicated region body
PF: predicated region fallthrough
CT: control target
= control target key end

     0   :  { %s166_s0 = inlined_call_operand.vmem [shape: f32[1,8,256], index: 0, kind: input, shape index: {}]   ;;  %s167_s1 = inlined_call_operand.vmem [shape: f32[8,4], index: 1, kind: input, shape index: {}]   ;;  %s168_s2 = inlined_call_operand.vmem [shape: f32[1,4], index: 2, kind: input, shape index: {}]   ;;  %s169_s3 = inlined_call_operand.vmem [shape: f32[8,4], index: 3, kind: input, shape index: {}]   ;;  %s170_s4 = inlined_call_operand.vmem [shape: f32[8,1], index: 4, kind: input, shape index: {}]   ;;  %s171_s5 = inlined_call_operand.hbm [shape: f32[1,8,256], index: 5, kind: output, shape index: {}]  }
   0x1   :  { %v21_v0 = vld [vmem:[%s166_s0] sm:$0xff]  ;;  %v22_v1 = vld [vmem:[%s166_s0 + $0x8] sm:$0xff] }
   0x2   :  { %v23_v2 = vadd.f32 %v22_v1, %v21_v0 }
   0x3   :  { %10 = vsyncpa [#allocation3], 0  ;;  %v27_v3 = vld [vmem:[%s167_s1] sm:$0xff]  ;;  %vm32_vm0 = vcmask 31744   ;;  %v42_v11 = vlaneseq  ;;  %v111_v24 = vmov 0  }
   0x4   :  { %24 = vadd.xlane.f32.xlu0 %v23_v2  ;;  %v28_v15 = vld [vmem:[%s168_s2] sm:$0x1]  ;;  %83 = vset.pattern.permute.xlu1 %v111_v24  ;;  %s112_s2 = smov [#allocation2]  }
   0x5   :  { %v43_v14 = vshrl.u32 %v42_v11, 7  ;;  %v29_v20 = vld [vmem:[%s169_s3] sm:$0xff]  ;;  %84 = vset.pattern.permute.xlu0 %v111_v24  ;;  %s72_s3 = sshll.u32 %s112_s2, 4  ;;  %s73_s3 = int_to_ptr.vmem [resolvable:$true] %s72_s3 }
   0x6   :  { %v30_v25 = vld [vmem:[%s170_s4] sm:$0xff]  ;;  %s89_s28 = scalar_lea.vmem %s73_s3, 256  ;;  %p94_p1 = scmp.lt.s32.totalorder %s73_s3, %s73_s3 }
   0x7   :  { %v44_v18 = vsub.s32 0, %v43_v14  ;;  %p90_p0 = scmp.ne.s32.totalorder %s73_s3, %s89_s28  ;;  %p95_p2 = scmp.lt.s32.totalorder %s89_s28, %s89_s28 }
   0x9   :  { %p96_p3 = por %p95_p2, %p94_p1 }
   0xb   :  { %p97_p4 = pnand %p96_p3, %p90_p0 }
  0x8d   :  { %v25_v4 = vpop.xlane.xlu0 %24 }
  0x8e   :  { %v26_v5 = vmul.f32 0.00390625, %v25_v4 }
  0x90   :  { %v31_v6 = vmul.f32 %v27_v3, %v26_v5 }
  0x92   :  { %v33_v7 = vsel %vm32_vm0, %v31_v6, 0.0 }
  0x93   :  { %v34_v8 = vrot.slane %v33_v7, 4 }
  0x95   :  { %v35_v9 = vadd.f32 %v34_v8, %v33_v7 }
  0x97   :  { %v36_v10 = vrot.slane %v35_v9, 2 }
  0x99   :  { %v37_v12 = vadd.f32 %v36_v10, %v35_v9 }
  0x9b   :  { %v38_v13 = vrot.slane %v37_v12, 1 }
  0x9d   :  { %v39_v16 = vadd.f32 %v38_v13, %v37_v12 }
  0x9f   :  { %v40_v17 = vadd.f32 %v39_v16, %v28_v15 }
  0xa1   :  { %v41_v19 = vmax.f32 %v40_v17, 0.0 }
  0xa3   :  { %v45_v21 = vrot.slane %v41_v19, %v44_v18 }
  0xa5   :  { %v46_v22 = vmul.f32 %v45_v21, %v29_v20 }
  0xa7   :  { %v47_v23 = vsel %vm32_vm0, %v46_v22, 0.0 }
  0xa8   :  { %48 = vadd.xlane.f32.xlu0 %v47_v23 }
 0x131   :  { %v49_v26 = vpop.xlane.xlu0 %48 }
 0x132   :  { %v50_v27 = vadd.f32 %v49_v26, %v30_v25 }
 0x134   :  { %v80_v28 = vmul.f32 -1.442695, %v50_v27 }
 0x136   :  { %85 = vpow2.f32 %v80_v28 }
 0x143   :  { %v86_v29 = vpop.eup %85 }
 0x144   :  { %v54_v30 = vadd.f32 1.0, %v86_v29 }
 0x146   :  { %87 = vrcp.f32 %v54_v30 }
 0x153   :  { %v88_v31 = vpop.eup %87 }
 0x154   :  { %59 = vperm.xlu1 %83, %v88_v31  }
 0x1cf   :  { %v60_v32 = vpop.permute.xlu1 %59 }
 0x1d0   :  { %v62_v33 = vmul.f32 %v60_v32, %v21_v0  ;;  %v63_v34 = vmul.f32 %v60_v32, %v22_v1 }
 0x1d2   :  { %64 = vst [vmem:[#allocation2] sm:$0xff] %v62_v33  ;;  %65 = vst [vmem:[#allocation2 + $0x8] sm:$0xff] %v63_v34 }
 0x1d3   :  { %100 = shalt.err (!%p97_p4)
}
 0x1d4   :  { %75 = dma.vmem_to_hbm [thread:$0]  %s73_s3, 256, %s171_s5, [#allocation3]  }
 0x1d5   :  { %109 = dma.done.wait [#allocation3], 256  }
 0x1d6   :  { %110 = vsyncadd [#allocation3], 4294967040 }
 0x1d7   :  { %79 = vsyncpa [#allocation3], 1 }

</bundles_post_ra>
